<compile_context>
chip_gen: v7x
topology: tpu7x:2x2x1
jax: 0.10.0
libtpu: 0.0.40
codegen_flags: <defaults>
</compile_context>

<pallas_src>
import jax
import jax.numpy as jnp
from jax.experimental import pallas as pl
from jax.experimental.pallas import tpu as pltpu


def vae_kernel(x_ref, eps_ref,
               w1_ref, b1_ref, wh_ref, bh_ref, ed_ref,
               recon_ref, mu_ref, lv_ref):
    x = x_ref[...]                                     # [n_bands, tile_n]
    eps = eps_ref[...]                                 # [n_ems,   tile_n]
    n_ems = eps.shape[0]

    # --- encoder: h = relu(W1 @ x + b1) -----------------------------------
    h = jnp.dot(w1_ref[...], x, preferred_element_type=jnp.float32)
    h = jnp.maximum(h + b1_ref[...], 0.0)              # [hidden, tile_n]

    # --- fused (mu | logvar) head ------------------------------------------
    m = jnp.dot(wh_ref[...], h, preferred_element_type=jnp.float32) + bh_ref[...]
    mu = m[:n_ems, :]                                  # [n_ems, tile_n]
    lv = m[n_ems:, :]                                  # [n_ems, tile_n]

    # --- reparameterize -----------------------------------------------------
    z = mu + jnp.exp(0.5 * lv) * eps

    # --- process_latent: softmax over the endmember (sublane) axis ----------
    zmax = jnp.max(z, axis=0, keepdims=True)
    p = jnp.exp(z - zmax)
    denom = jnp.sum(p, axis=0, keepdims=True)
    a = p * pl.reciprocal(denom, approx=True)          # EUP vrcp, VPU stays free

    # --- decoder: linear mixing  recon = E @ a ------------------------------
    recon = jnp.dot(ed_ref[...], a, preferred_element_type=jnp.float32)

    # lane-dense stores: last dim = tile_n (multiple of 128) for all outputs
    recon_ref[...] = recon.astype(recon_ref.dtype)
    mu_ref[...] = mu.astype(mu_ref.dtype)
    lv_ref[...] = lv.astype(lv_ref.dtype)


def vae_forward(x, eps, params, *, tile_n=512):
    """Canonical BaseVAE forward.

    x:   [B, n_bands, H, W] float32 (PyTorch NCHW hyperspectral image)
    eps: [B, n_ems,   H, W] float32 standard-normal reparameterization noise
    Returns (recon [B, n_bands, H, W], mu [B, n_ems, H, W], logvar [B, n_ems, H, W]).
    """
    B, n_bands, H, W = x.shape
    n_ems = eps.shape[1]
    hidden = params["w1"].shape[0]
    assert tile_n % 128 == 0, "tile_n must be a multiple of the 128-wide lane axis"

    hw = H * W
    # Pixels-on-lanes layout: a free (contiguous) reshape of NCHW.
    x_f = x.reshape(B, n_bands, hw)
    e_f = eps.reshape(B, n_ems, hw)

    # Pad the pixel axis so arbitrary image sizes work with large tiles.
    n_tiles = pl.cdiv(hw, tile_n)
    hw_pad = n_tiles * tile_n
    if hw_pad != hw:
        x_f = jnp.pad(x_f, ((0, 0), (0, 0), (0, hw_pad - hw)))
        e_f = jnp.pad(e_f, ((0, 0), (0, 0), (0, hw_pad - hw)))

    # Batch dim is squeezed out of the kernel view (None == pl.Squeezed()).
    px_tile = lambda d: pl.BlockSpec((None, d, tile_n), lambda b, i: (b, 0, i))
    full = lambda shp: pl.BlockSpec(shp, lambda b, i: (0, 0))   # resident weights

    grid_spec = pltpu.PrefetchScalarGridSpec(
        num_scalar_prefetch=0,
        grid=(B, n_tiles),
        in_specs=[
            px_tile(n_bands),            # x
            px_tile(n_ems),              # eps
            full((hidden, n_bands)),     # w1
            full((hidden, 1)),           # b1
            full((2 * n_ems, hidden)),   # whead (fused mu|logvar)
            full((2 * n_ems, 1)),        # bhead
            full((n_bands, n_ems)),      # Edec (endmembers)
        ],
        out_specs=[
            px_tile(n_bands),            # recon
            px_tile(n_ems),              # mu
            px_tile(n_ems),              # logvar
        ],
    )

    out_shapes = (
        jax.ShapeDtypeStruct((B, n_bands, hw_pad), jnp.float32),
        jax.ShapeDtypeStruct((B, n_ems, hw_pad), jnp.float32),
        jax.ShapeDtypeStruct((B, n_ems, hw_pad), jnp.float32),
    )

    recon, mu, lv = pl.pallas_call(
        vae_kernel,
        out_shape=out_shapes,
        grid_spec=grid_spec,
        compiler_params=pltpu.CompilerParams(
            dimension_semantics=("parallel", "parallel")),
    )(x_f, e_f, params["w1"], params["b1"],
      params["whead"], params["bhead"], params["Edec"])

    recon = recon[:, :, :hw].reshape(B, n_bands, H, W)
    mu = mu[:, :, :hw].reshape(B, n_ems, H, W)
    lv = lv[:, :, :hw].reshape(B, n_ems, H, W)
    return recon, mu, lv


def reference_forward(x, eps, params, n_ems):
    B, n_bands, H, W = x.shape
    xf = x.reshape(B, n_bands, H * W)
    ef = eps.reshape(B, n_ems, H * W)
    h = jnp.maximum(jnp.einsum("hf,bfp->bhp", params["w1"], xf) + params["b1"], 0.0)
    m = jnp.einsum("eh,bhp->bep", params["whead"], h) + params["bhead"]
    mu, lv = m[:, :n_ems], m[:, n_ems:]
    z = mu + jnp.exp(0.5 * lv) * ef
    a = jax.nn.softmax(z, axis=1)
    recon = jnp.einsum("fe,bep->bfp", params["Edec"], a)
    rs = lambda t, d: t.reshape(B, d, H, W)
    return rs(recon, n_bands), rs(mu, n_ems), rs(lv, n_ems)


if __name__ == "__main__":
    # Small shapes implied by the module: n_bands spectral bands, n_ems endmembers.
    n_bands, n_ems, hidden = 32, 8, 32
    B, H, W = 2, 32, 32          # 2048 pixels -> grid (2, 2) with tile_n=512

    key = jax.random.PRNGKey(0)
    kx, ke, k1, k2, k3 = jax.random.split(key, 5)

    x = jax.random.uniform(kx, (B, n_bands, H, W), dtype=jnp.float32)
    eps = jax.random.normal(ke, (B, n_ems, H, W), dtype=jnp.float32)

    params = {
        "w1":    0.1 * jax.random.normal(k1, (hidden, n_bands), dtype=jnp.float32),
        "b1":    jnp.zeros((hidden, 1), jnp.float32),
        "whead": 0.1 * jax.random.normal(k2, (2 * n_ems, hidden), dtype=jnp.float32),
        "bhead": jnp.zeros((2 * n_ems, 1), jnp.float32),
        "Edec":  jax.nn.sigmoid(jax.random.normal(k3, (n_bands, n_ems), dtype=jnp.float32)),
    }

    recon, mu, lv = vae_forward(x, eps, params)
    jax.block_until_ready((recon, mu, lv))

    r_ref, mu_ref, lv_ref = reference_forward(x, eps, params, n_ems)
    assert jnp.allclose(mu, mu_ref, atol=1e-4, rtol=1e-4)
    assert jnp.allclose(lv, lv_ref, atol=1e-4, rtol=1e-4)
    # Looser tolerance on recon: softmax denominator uses the EUP approx reciprocal.
    assert jnp.allclose(recon, r_ref, atol=2e-3, rtol=2e-3)

    print("KERNEL_OK")
</pallas_src>

<mosaic_0001>
module attributes {stable_mosaic.version = 11 : i64} {
  func.func @vae_kernel(%arg0: i32, %arg1: i32, %arg2: memref<1x32x512xf32, #tpu.memory_space<vmem>>, %arg3: memref<1x8x512xf32, #tpu.memory_space<vmem>>, %arg4: memref<32x32xf32, #tpu.memory_space<vmem>>, %arg5: memref<32x1xf32, #tpu.memory_space<vmem>>, %arg6: memref<16x32xf32, #tpu.memory_space<vmem>>, %arg7: memref<16x1xf32, #tpu.memory_space<vmem>>, %arg8: memref<32x8xf32, #tpu.memory_space<vmem>>, %arg9: memref<1x32x512xf32, #tpu.memory_space<vmem>>, %arg10: memref<1x8x512xf32, #tpu.memory_space<vmem>>, %arg11: memref<1x8x512xf32, #tpu.memory_space<vmem>>) attributes {dimension_semantics = [#tpu.dimension_semantics<parallel>, #tpu.dimension_semantics<parallel>], iteration_bounds = array<i64: 2, 2>, scalar_prefetch = 0 : i64, scratch_operands = 0 : i64, tpu.core_type = #tpu.core_type<tc>, window_params = [{transform_indices = @transform_0, window_bounds = array<i64: 1, 32, 512>}, {transform_indices = @transform_1, window_bounds = array<i64: 1, 8, 512>}, {pipeline_mode = #tpu.pipeline_mode<synchronous>, transform_indices = @transform_2, window_bounds = array<i64: 32, 32>}, {pipeline_mode = #tpu.pipeline_mode<synchronous>, transform_indices = @transform_3, window_bounds = array<i64: 32, 1>}, {pipeline_mode = #tpu.pipeline_mode<synchronous>, transform_indices = @transform_4, window_bounds = array<i64: 16, 32>}, {pipeline_mode = #tpu.pipeline_mode<synchronous>, transform_indices = @transform_5, window_bounds = array<i64: 16, 1>}, {pipeline_mode = #tpu.pipeline_mode<synchronous>, transform_indices = @transform_6, window_bounds = array<i64: 32, 8>}, {transform_indices = @transform_7, window_bounds = array<i64: 1, 32, 512>}, {transform_indices = @transform_8, window_bounds = array<i64: 1, 8, 512>}, {transform_indices = @transform_9, window_bounds = array<i64: 1, 8, 512>}]} {
    %c0 = arith.constant 0 : index
    %c0_0 = arith.constant 0 : index
    %c0_1 = arith.constant 0 : index
    %0 = vector.load %arg2[%c0, %c0_0, %c0_1] : memref<1x32x512xf32, #tpu.memory_space<vmem>>, vector<1x32x512xf32>
    %1 = vector.shape_cast %0 : vector<1x32x512xf32> to vector<32x512xf32>
    %c0_2 = arith.constant 0 : index
    %c0_3 = arith.constant 0 : index
    %c0_4 = arith.constant 0 : index
    %2 = vector.load %arg3[%c0_2, %c0_3, %c0_4] : memref<1x8x512xf32, #tpu.memory_space<vmem>>, vector<1x8x512xf32>
    %3 = vector.shape_cast %2 : vector<1x8x512xf32> to vector<8x512xf32>
    %c0_5 = arith.constant 0 : index
    %c0_6 = arith.constant 0 : index
    %4 = vector.load %arg4[%c0_5, %c0_6] : memref<32x32xf32, #tpu.memory_space<vmem>>, vector<32x32xf32>
    %cst = arith.constant dense<0.000000e+00> : vector<32x512xf32>
    %5 = tpu.matmul %4, %1, %cst {dimension_numbers = #tpu.dot_dimension_numbers<[1], [0], [0], [1], [0, 0, 1, 1], [], []>} : vector<32x32xf32>, vector<32x512xf32>, vector<32x512xf32> -> vector<32x512xf32>
    %c0_7 = arith.constant 0 : index
    %c0_8 = arith.constant 0 : index
    %6 = vector.load %arg5[%c0_7, %c0_8] : memref<32x1xf32, #tpu.memory_space<vmem>>, vector<32x1xf32>
    %7 = vector.broadcast %6 : vector<32x1xf32> to vector<32x512xf32>
    %8 = arith.addf %5, %7 : vector<32x512xf32>
    %cst_9 = arith.constant 0.000000e+00 : f32
    %9 = vector.broadcast %cst_9 : f32 to vector<32x512xf32>
    %10 = arith.maximumf %8, %9 : vector<32x512xf32>
    %c0_10 = arith.constant 0 : index
    %c0_11 = arith.constant 0 : index
    %11 = vector.load %arg6[%c0_10, %c0_11] : memref<16x32xf32, #tpu.memory_space<vmem>>, vector<16x32xf32>
    %cst_12 = arith.constant dense<0.000000e+00> : vector<16x512xf32>
    %12 = tpu.matmul %11, %10, %cst_12 {dimension_numbers = #tpu.dot_dimension_numbers<[1], [0], [0], [1], [0, 0, 1, 1], [], []>} : vector<16x32xf32>, vector<32x512xf32>, vector<16x512xf32> -> vector<16x512xf32>
    %c0_13 = arith.constant 0 : index
    %c0_14 = arith.constant 0 : index
    %13 = vector.load %arg7[%c0_13, %c0_14] : memref<16x1xf32, #tpu.memory_space<vmem>>, vector<16x1xf32>
    %14 = vector.broadcast %13 : vector<16x1xf32> to vector<16x512xf32>
    %15 = arith.addf %12, %14 : vector<16x512xf32>
    %16 = vector.extract_strided_slice %15 {offsets = [0, 0], sizes = [8, 512], strides = [1, 1]} : vector<16x512xf32> to vector<8x512xf32>
    %17 = vector.extract_strided_slice %15 {offsets = [8, 0], sizes = [8, 512], strides = [1, 1]} : vector<16x512xf32> to vector<8x512xf32>
    %cst_15 = arith.constant 5.000000e-01 : f32
    %18 = vector.broadcast %cst_15 : f32 to vector<8x512xf32>
    %19 = arith.mulf %18, %17 : vector<8x512xf32>
    %20 = math.exp %19 : vector<8x512xf32>
    %21 = arith.mulf %20, %3 : vector<8x512xf32>
    %22 = arith.addf %16, %21 : vector<8x512xf32>
    %cst_16 = arith.constant dense<0xFF800000> : vector<512xf32>
    %23 = vector.multi_reduction <maximumf>, %22, %cst_16 [0] : vector<8x512xf32> to vector<512xf32>
    %24 = vector.shape_cast %23 : vector<512xf32> to vector<1x512xf32>
    %25 = vector.broadcast %24 : vector<1x512xf32> to vector<8x512xf32>
    %26 = arith.subf %22, %25 : vector<8x512xf32>
    %27 = math.exp %26 : vector<8x512xf32>
    %cst_17 = arith.constant dense<0.000000e+00> : vector<512xf32>
    %28 = vector.multi_reduction <add>, %27, %cst_17 [0] : vector<8x512xf32> to vector<512xf32>
    %29 = vector.shape_cast %28 : vector<512xf32> to vector<1x512xf32>
    %30 = tpu.reciprocal %29 {approx = true} : vector<1x512xf32> -> vector<1x512xf32>
    %31 = vector.broadcast %30 : vector<1x512xf32> to vector<8x512xf32>
    %32 = arith.mulf %27, %31 : vector<8x512xf32>
    %c0_18 = arith.constant 0 : index
    %c0_19 = arith.constant 0 : index
    %33 = vector.load %arg8[%c0_18, %c0_19] : memref<32x8xf32, #tpu.memory_space<vmem>>, vector<32x8xf32>
    %cst_20 = arith.constant dense<0.000000e+00> : vector<32x512xf32>
    %34 = tpu.matmul %33, %32, %cst_20 {dimension_numbers = #tpu.dot_dimension_numbers<[1], [0], [0], [1], [0, 0, 1, 1], [], []>} : vector<32x8xf32>, vector<8x512xf32>, vector<32x512xf32> -> vector<32x512xf32>
    %c0_21 = arith.constant 0 : index
    %c0_22 = arith.constant 0 : index
    %c0_23 = arith.constant 0 : index
    %35 = vector.load %arg9[%c0_21, %c0_22, %c0_23] : memref<1x32x512xf32, #tpu.memory_space<vmem>>, vector<1x32x512xf32>
    %36 = vector.shape_cast %35 : vector<1x32x512xf32> to vector<32x512xf32>
    %37 = vector.shape_cast %34 : vector<32x512xf32> to vector<1x32x512xf32>
    tpu.vector_store %arg9[%c0_21, %c0_22, %c0_23], %37 {strides = array<i32>} : memref<1x32x512xf32, #tpu.memory_space<vmem>>, vector<1x32x512xf32>,
    %c0_24 = arith.constant 0 : index
    %c0_25 = arith.constant 0 : index
    %c0_26 = arith.constant 0 : index
    %38 = vector.load %arg10[%c0_24, %c0_25, %c0_26] : memref<1x8x512xf32, #tpu.memory_space<vmem>>, vector<1x8x512xf32>
    %39 = vector.shape_cast %38 : vector<1x8x512xf32> to vector<8x512xf32>
    %40 = vector.shape_cast %16 : vector<8x512xf32> to vector<1x8x512xf32>
    tpu.vector_store %arg10[%c0_24, %c0_25, %c0_26], %40 {strides = array<i32>} : memref<1x8x512xf32, #tpu.memory_space<vmem>>, vector<1x8x512xf32>,
    %c0_27 = arith.constant 0 : index
    %c0_28 = arith.constant 0 : index
    %c0_29 = arith.constant 0 : index
    %41 = vector.load %arg11[%c0_27, %c0_28, %c0_29] : memref<1x8x512xf32, #tpu.memory_space<vmem>>, vector<1x8x512xf32>
    %42 = vector.shape_cast %41 : vector<1x8x512xf32> to vector<8x512xf32>
    %43 = vector.shape_cast %17 : vector<8x512xf32> to vector<1x8x512xf32>
    tpu.vector_store %arg11[%c0_27, %c0_28, %c0_29], %43 {strides = array<i32>} : memref<1x8x512xf32, #tpu.memory_space<vmem>>, vector<1x8x512xf32>,
    return
  }
  func.func @transform_0(%arg0: i32, %arg1: i32) -> (i32, i32, i32) {
    %c0_i32 = arith.constant 0 : i32
    %c0_i32_0 = arith.constant 0 : i32
    return %arg0, %c0_i32, %arg1 : i32, i32, i32
  }
  func.func @transform_1(%arg0: i32, %arg1: i32) -> (i32, i32, i32) {
    %c0_i32 = arith.constant 0 : i32
    %c0_i32_0 = arith.constant 0 : i32
    return %arg0, %c0_i32, %arg1 : i32, i32, i32
  }
  func.func @transform_2(%arg0: i32, %arg1: i32) -> (i32, i32) {
    %c0_i32 = arith.constant 0 : i32
    %c0_i32_0 = arith.constant 0 : i32
    %c0_i32_1 = arith.constant 0 : i32
    return %c0_i32, %c0_i32_0 : i32, i32
  }
  func.func @transform_3(%arg0: i32, %arg1: i32) -> (i32, i32) {
    %c0_i32 = arith.constant 0 : i32
    %c0_i32_0 = arith.constant 0 : i32
    %c0_i32_1 = arith.constant 0 : i32
    return %c0_i32, %c0_i32_0 : i32, i32
  }
  func.func @transform_4(%arg0: i32, %arg1: i32) -> (i32, i32) {
    %c0_i32 = arith.constant 0 : i32
    %c0_i32_0 = arith.constant 0 : i32
    %c0_i32_1 = arith.constant 0 : i32
    return %c0_i32, %c0_i32_0 : i32, i32
  }
  func.func @transform_5(%arg0: i32, %arg1: i32) -> (i32, i32) {
    %c0_i32 = arith.constant 0 : i32
    %c0_i32_0 = arith.constant 0 : i32
    %c0_i32_1 = arith.constant 0 : i32
    return %c0_i32, %c0_i32_0 : i32, i32
  }
  func.func @transform_6(%arg0: i32, %arg1: i32) -> (i32, i32) {
    %c0_i32 = arith.constant 0 : i32
    %c0_i32_0 = arith.constant 0 : i32
    %c0_i32_1 = arith.constant 0 : i32
    return %c0_i32, %c0_i32_0 : i32, i32
  }
  func.func @transform_7(%arg0: i32, %arg1: i32) -> (i32, i32, i32) {
    %c0_i32 = arith.constant 0 : i32
    %c0_i32_0 = arith.constant 0 : i32
    return %arg0, %c0_i32, %arg1 : i32, i32, i32
  }
  func.func @transform_8(%arg0: i32, %arg1: i32) -> (i32, i32, i32) {
    %c0_i32 = arith.constant 0 : i32
    %c0_i32_0 = arith.constant 0 : i32
    return %arg0, %c0_i32, %arg1 : i32, i32, i32
  }
  func.func @transform_9(%arg0: i32, %arg1: i32) -> (i32, i32, i32) {
    %c0_i32 = arith.constant 0 : i32
    %c0_i32_0 = arith.constant 0 : i32
    return %arg0, %c0_i32, %arg1 : i32, i32, i32
  }
}

</mosaic_0001>

<bundles_post_ra>
// kernel: tpu_custom_call.1
= control target key start
LH: loop header
LB: loop body
LE: loop exit
PB: predicated region body
PF: predicated region fallthrough
CT: control target
= control target key end

     0   :  { %s2373_s0 = inlined_call_operand.hbm [shape: f32[2,32,1024], index: 0, kind: input, shape index: {}]   ;;  %s2374_s1 = inlined_call_operand.hbm [shape: f32[2,8,1024], index: 1, kind: input, shape index: {}]   ;;  %s2375_s2 = inlined_call_operand.vmem [shape: f32[32,32], index: 2, kind: input, shape index: {}]   ;;  %s2376_s3 = inlined_call_operand.vmem [shape: f32[32,1], index: 3, kind: input, shape index: {}]   ;;  %s2377_s4 = inlined_call_operand.vmem [shape: f32[16,32], index: 4, kind: input, shape index: {}]   ;;  %s2378_s5 = inlined_call_operand.vmem [shape: f32[16,1], index: 5, kind: input, shape index: {}]   ;;  %s2379_s6 = inlined_call_operand.vmem [shape: f32[32,8], index: 6, kind: input, shape index: {}]   ;;  %s2380_s7 = inlined_call_operand.hbm [shape: f32[2,32,1024], index: 7, kind: output, shape index: {0}]   ;;  %s2381_s8 = inlined_call_operand.hbm [shape: f32[2,8,1024], index: 8, kind: output, shape index: {1}]   ;;  %s2382_s9 = inlined_call_operand.hbm [shape: f32[2,8,1024], index: 9, kind: output, shape index: {2}]  }
   0x1   :  { %2399 = sst [smem:[#allocation24_spill]] %s2373_s0 }
   0x2   :  { %2400 = sst [smem:[#allocation25_spill]] %s2380_s7 }
   0x3   :  { %2401 = sst [smem:[#allocation26_spill]] %s2381_s8 }
   0x4   :  { %2402 = sst [smem:[#allocation27_spill]] %s2382_s9 }
   0x5   :  { %15 = vsyncpa [#allocation3], 0 }
   0x6   :  { %17 = vsyncpa [#allocation3 + $0x1], 0 }
   0x7   :  { %18 = vsyncpa [#allocation6], 0 }
   0x8   :  { %20 = vsyncpa [#allocation6 + $0x1], 0 }
   0x9   :  { %21 = vsyncpa [#allocation4], 0 }
   0xa   :  { %23 = vsyncpa [#allocation4 + $0x1], 0 }
   0xb   :  { %24 = vsyncpa [#allocation9], 0 }
   0xc   :  { %26 = vsyncpa [#allocation9 + $0x1], 0  ;;  %s1913_s30 = smov 0   ;;  %s1915_s10 = smov 0  }
   0xd   :  { %s1917_s11 = smov 0   ;;  %s1919_s12 = smov 0  }
   0xe   :  { %s1921_s13 = smov 0   ;;  %s1923_s14 = smov 0  }
   0xf   :  { %s1925_s15 = smov 0   ;;  %s1927_s16 = smov 0  }
  0x10 LB: > { %2403 = sst [smem:[#allocation15_spill]] %s1820_s30  ;;  %s1954_s17 = sadd.s32 4294967295, %s1848_s16   ;;  %s1848_s16 = sphi %s1927_s16, %s32_s16   ;;  %s1844_s15 = sphi %s1925_s15, %s2442_s15   ;;  %s1840_s14 = sphi %s1923_s14, %s2441_s14   ;;  %s1836_s13 = sphi %s1921_s13, %s2440_s13   ;;  %s1832_s12 = sphi %s1919_s12, %s2439_s12   ;;  %s1828_s11 = sphi %s1917_s11, %s2434_s11   ;;  %s1824_s10 = sphi %s1915_s10, %s2438_s10   ;;  %s1820_s30 = sphi %s1913_s30, %s2437_s30  }
  0x11   : > { %2404 = sst [smem:[#allocation16_spill]] %s1828_s11  ;;  %s2389_s18 = sadd.s32 4294967294, %s1848_s16  }
  0x12   : > { %2405 = sst [smem:[#allocation17_spill]] %s1836_s13  ;;  %s41_s19 = sadd.s32 1, %s1840_s14 }
  0x13   : > { %2406 = sst [smem:[#allocation18_spill]] %s1954_s17  ;;  %s44_s20 = sadd.s32 1, %s1844_s15 }
  0x14   : > { %p42_p0 = scmp.ge.s32.totalorder %s41_s19, 2  ;;  %s53_s21 = sadd.s32 1, %s1828_s11 }
  0x15   : > { %p60_p1 = scmp.ne.s32.totalorder %s1828_s11, %s1824_s10  ;;  %p61_p2 = scmp.eq.s32.totalorder %s1848_s16, 0 }
  0x16   : > { %s2444_s19 = smov (%p42_p0, %s41_s19), 0  ;;  %s2446_s20 = smov (!%p42_p0, %s44_s20), %s1844_s15 }
  0x17   : > { %2407 = sst [smem:[#allocation19_spill]] %s2444_s19  ;;  %s49_s22 = ssub.s32 %s1840_s14, %s2444_s19 }
  0x18   : > { %p1968_p3 = por %p61_p2, %p60_p1  ;;  %p46_p4 = scmp.ge.s32.totalorder %s2446_s20, 2 }
  0x19   : > { %p66_p5 = scmp.ne.s32.totalorder %s1824_s10, %s1820_s30  ;;  %p67_p6 = scmp.eq.s32.totalorder %s1954_s17, 0 }
  0x1a   : > { %p225_p7 = scmp.eq.s32.totalorder %s1954_s17, 3  ;;  %s2448_s20 = smov (%p46_p4, %s2446_s20), 0 }
  0x1b   : > { %2409 = sst [smem:[#allocation20_spill]] %s2448_s20  ;;  %p1978_p8 = por %p67_p6, %p66_p5 }
  0x1c   : > { %p1982_p9 = por %p225_p7, %p60_p1  ;;  %s48_s26 = ssub.s32 %s1844_s15, %s2448_s20 }
  0x1d   : > { %s2410_s24 = scalar_select %p1978_p8, 1, 0 }
  0x1e   : > { %s2411_s25 = scalar_select %p1982_p9, 1, 0 }
  0x1f   : > { %p231_p10 = scmp.eq.s32.totalorder %s2389_s18, 3  ;;  %s50_s27 = sor.u32 %s49_s22, %s48_s26 }
  0x20   : > { %2412 = sst [smem:[#allocation21_spill]] %s2411_s25  ;;  %p51_p11 = scmp.eq.s32.totalorder %s50_s27, 0 }
  0x21   : > { %p1990_p12 = por %p231_p10, %p66_p5  ;;  %p1526_p13 = scmp.lt.s32.totalorder %s1848_s16, 4 }
  0x22   : > { %s1996_s29 = sand.u32 1, %s1828_s11   ;;  %s1420_s7 = sshll.u32 %s1840_s14, 2 }
  0x23   : > { %s2413_s28 = scalar_select %p1990_p12, 1, 0 }
  0x24   : > { %s1999_s19 = scalar_select %p51_p11, %s1828_s11, %s53_s21  }
  0x25   : > { %2414 = sst [smem:[#allocation22_spill]] %s2413_s28  ;;  %s1419_s30 = sshll.u32 %s1996_s29, 7 }
  0x26   : > { %2415 = sst [smem:[#allocation23_spill]] %s1999_s19  ;;  %s1421_s20 = sshll.u32 %s1844_s15, 5 }
  0x27   : > { %s326_s9 = scalar_lea.vmem [#allocation2], %s1419_s30  ;;  %s332_s22 = sadd.s32 %s1421_s20, %s1420_s7 }
  0x28   : > { %s335_s8 = sshll.u32 %s326_s9, 4  ;;  %s1422_s26 = sshll.u32 %s332_s22, 7  ;;  %s2006_s8 = int_to_ptr.vmem [resolvable:$true] %s335_s8 }
  0x29   : > { %p2010_p0 = pnand %p1526_p13, %p1968_p3  ;;  %s2417_s0 = sld [smem:[#allocation24_spill]] }
  0x2a   : > { %s323_s9 = scalar_lea.sflag [#allocation3], %s1996_s29 }
  0x2b   : > { %p1628_p3 = pneg %p2010_p0 }
  0x2f   : > { %s2017_s21 = scalar_lea.hbm %s2417_s0, %s1422_s26  ;;  %s1631_s23 = scalar_lea.hbm %s2417_s0, 8192 }
  0x30   : > { %s1626_s30 = scalar_lea.hbm %s2017_s21, 2048  ;;  %p1632_p6 = scmp.lt.u32.totalorder %s2017_s21, %s2417_s0 }
  0x31   : > { %p1627_p2 = scmp.ne.s32.totalorder %s2017_s21, %s1626_s30  ;;  %p1633_p7 = scmp.lt.u32.totalorder %s1631_s23, %s1626_s30 }
  0x32   : > { %p1635_p11 = scmp.lt.u32.totalorder %s1626_s30, %s2017_s21 }
  0x33   : > { %p1629_p4 = pnand %p1628_p3, %p1627_p2  ;;  %p1634_p10 = por %p1633_p7, %p1632_p6 }
  0x35   : > { %p1630_p5 = pneg %p1629_p4  ;;  %p1636_p13 = por %p1635_p11, %p1634_p10 }
  0x37   : > { %p1637_p1 = pnand %p1636_p13, %p1630_p5 }
  0x39   : > { %1640 = shalt.err (!%p1637_p1)
}
  0x3a   : > { %s1641_s26 = scalar_lea.vmem %s2006_s8, 2048  ;;  %s1850_s20 = smov [#allocation2]  }
  0x3b   : > { %p1642_p2 = scmp.ne.s32.totalorder %s2006_s8, %s1641_s26  ;;  %s1646_s18 = sshll.u32 %s1850_s20, 4  ;;  %s1647_s18 = int_to_ptr.vmem [resolvable:$false] %s1646_s18 }
  0x3c   : > { %s1648_s28 = scalar_lea.vmem %s1647_s18, 4096  ;;  %p1649_p9 = scmp.lt.s32.totalorder %s2006_s8, %s1647_s18 }
  0x3d   : > { %p1644_p4 = pnand %p1642_p2, %p1628_p3  ;;  %p1650_p6 = scmp.lt.s32.totalorder %s1648_s28, %s1641_s26 }
  0x3f   : > { %p1645_p12 = pneg %p1644_p4  ;;  %p1651_p7 = por %p1650_p6, %p1649_p9 }
  0x41   : > { %p1652_p10 = pnand %p1651_p7, %p1645_p12 }
  0x43   : > { %1655 = shalt.err (!%p1652_p10)
}
  0x44   : > { %s1851_s30 = smov 1024   ;;  %s1852_s23 = smov 512  }
  0x45   : > { %s1853_s22 = smov 32   ;;  %p364_p9 = scmp.lt.s32.totalorder %s1848_s16, 5 }
  0x46   : > { %1512 = dma.hbm_to_vmem [thread:$0]  (!%p2010_p0), %s2017_s21, 2048, %s2006_s8, %s323_s9, %s1851_s30, %s1852_s23, %s1853_s22  }
  0x47   : > { %s1423_s26 = sshll.u32 %s1996_s29, 5  ;;  %s1425_s20 = sshll.u32 %s1844_s15, 3 }
  0x48   : > { %p2418_p12 = scmp.ge.s32.totalorder %s1848_s16, 1  ;;  %s355_s28 = sadd.s32 %s1425_s20, %s1420_s7 }
  0x49   : > { %s349_s0 = scalar_lea.vmem [#allocation5], %s1423_s26  ;;  %s1426_s11 = sshll.u32 %s355_s28, 7 }
  0x4a   : > { %p2053_p1 = pnand %p2418_p12, %p364_p9  ;;  %s359_s19 = sshll.u32 %s349_s0, 4  ;;  %s2059_s19 = int_to_ptr.vmem [resolvable:$true] %s359_s19 }
  0x4b   : > { %s357_s13 = scalar_lea.hbm %s2374_s1, %s1426_s11  ;;  %s346_s8 = scalar_lea.sflag [#allocation6], %s1996_s29 }
  0x4c   : > { %s1656_s21 = scalar_lea.hbm %s357_s13, 512  ;;  %s1661_s7 = scalar_lea.hbm %s2374_s1, 2048 }
  0x4d   : > { %p1657_p5 = scmp.ne.s32.totalorder %s357_s13, %s1656_s21  ;;  %p1662_p2 = scmp.lt.u32.totalorder %s357_s13, %s2374_s1 }
  0x4e   : > { %p1663_p4 = scmp.lt.u32.totalorder %s1661_s7, %s1656_s21  ;;  %p1665_p7 = scmp.lt.u32.totalorder %s1656_s21, %s357_s13 }
  0x4f   : > { %p1659_p11 = pnand %p1657_p5, %p1628_p3 }
  0x50   : > { %p1664_p6 = por %p1663_p4, %p1662_p2 }
  0x51   : > { %p1660_p13 = pneg %p1659_p11 }
  0x52   : > { %p1666_p10 = por %p1665_p7, %p1664_p6 }
  0x54   : > { %p1667_p9 = pnand %p1666_p10, %p1660_p13 }
  0x56   : > { %1670 = shalt.err (!%p1667_p9)
}
  0x57   : > { %s1671_s11 = scalar_lea.vmem %s2059_s19, 512  ;;  %s1854_s17 = smov [#allocation5]  }
  0x58   : > { %p1672_p12 = scmp.ne.s32.totalorder %s2059_s19, %s1671_s11  ;;  %s1676_s25 = sshll.u32 %s1854_s17, 4  ;;  %s1677_s25 = int_to_ptr.vmem [resolvable:$false] %s1676_s25 }
  0x59   : > { %s1678_s29 = scalar_lea.vmem %s1677_s25, 1024  ;;  %p1679_p8 = scmp.lt.s32.totalorder %s2059_s19, %s1677_s25 }
  0x5a   : > { %p1674_p5 = pnand %p1672_p12, %p1628_p3  ;;  %p1680_p2 = scmp.lt.s32.totalorder %s1678_s29, %s1671_s11 }
  0x5c   : > { %p1675_p11 = pneg %p1674_p5  ;;  %p1681_p4 = por %p1680_p2, %p1679_p8 }
  0x5e   : > { %p1682_p6 = pnand %p1681_p4, %p1675_p11 }
  0x60   : > { %1685 = shalt.err (!%p1682_p6)
}
  0x61   : > { %1515 = dma.hbm_to_vmem [thread:$0]  (!%p2010_p0), %s357_s13, 512, %s2059_s19, %s346_s8  }
  0x62   : > { %368 = sbr.rel (%p2053_p1) target bundleno = 891 (0x37b), region = 48  ;;  %s2086_s22 = sand.u32 (!%p2053_p1), 1, %s1824_s10  }
  0x63   : > { %s1428_s26 = sshll.u32 (!%p2053_p1), %s2086_s22, 7  ;;  %s371_s20 = scalar_lea.sflag (!%p2053_p1), [#allocation3], %s2086_s22 }
  0x64   : > { %s2092_s28 = scalar_lea.vmem (!%p2053_p1), [#allocation2], %s1428_s26  ;;  %p2420_p8 = scmp.ne.s32.totalorder (!%p2053_p1), %s2410_s24, 0 }
  0x69   : > { %1803 = dma.done.wait (%p2420_p8), %s371_s20, 2048  }
  0x6a   : > { %1805 = vsyncadd (%p2420_p8), %s371_s20, 4294965248  ;;  %s2099_s13 = sshll.u32 %s2086_s22, 5  ;;  %s380_s19 = scalar_lea.sflag [#allocation6], %s2086_s22 }
  0x6b   : > { %s2103_s27 = scalar_lea.vmem [#allocation5], %s2099_s13 }
  0x6c   : > { %1807 = dma.done.wait (%p2420_p8), %s380_s19, 512  }
  0x6d   : > { %1809 = vsyncadd (%p2420_p8), %s380_s19, 4294966784  ;;  %v1855_v0 = vmov 0.0   ;;  %v1856_v1 = vmov 0   ;;  %v439_v2 = vld [vmem:[%s2092_s28 + $0x8] sm:$0xff]  ;;  %v441_v4 = vld [vmem:[%s2092_s28 + $0x18] sm:$0xff]  ;;  %vm486_vm0 = vcmask 261120  }
  0x6e   : > { %563 = vmatprep.mubr.f32.mxu0 %v1855_v0  ;;  %652 = vmatprep.mubr.f32.mxu1 %v1855_v0  ;;  %v443_v3 = vld [vmem:[%s2092_s28 + $0x28] sm:$0xff]  ;;  %v445_v6 = vld [vmem:[%s2092_s28 + $0x38] sm:$0xff]  ;;  %v438_v7 = vld [vmem:[%s2092_s28] sm:$0xff]  ;;  %s2188_s0 = scalar_lea.vmem [#allocation8], %s2099_s13  ;;  %s2195_s11 = scalar_lea.vmem [#allocation10], %s2099_s13  ;;  %vm959_vm1 = vcmask 64512  }
  0x6f   : > { %1600 = vset.pattern.permute.xlu0 %v1856_v1  ;;  %1601 = vset.pattern.permute.xlu1 %v1856_v1  ;;  %v1467_v5 = vpack.c.bf16 %v443_v3, %v439_v2  ;;  %v442_v8 = vld [vmem:[%s2092_s28 + $0x20] sm:$0xff]  ;;  %v1475_v9 = vpack.c.bf16 %v445_v6, %v441_v4  ;;  %v440_v11 = vld [vmem:[%s2092_s28 + $0x10] sm:$0xff]  ;;  %v447_v13 = vld [vmem:[%s2092_s28 + $0x48] sm:$0xff]  ;;  %s2421_s29 = sld [smem:[#allocation17_spill]]  ;;  %s2422_s20 = sld [smem:[#allocation18_spill]] }
  0x70   : > { %v1469_v10 = vpack.c.bf16 %v442_v8, %v438_v7  ;;  %v444_v12 = vld [vmem:[%s2092_s28 + $0x30] sm:$0xff]  ;;  %v451_v15 = vld [vmem:[%s2092_s28 + $0x68] sm:$0xff]  ;;  %v449_v16 = vld [vmem:[%s2092_s28 + $0x58] sm:$0xff]  ;;  %s2423_s8 = sld [smem:[#allocation21_spill]]  ;;  %s2398_s21 = sshll.u32 %s1832_s12, 2 }
  0x71   : > { %1468 = vmatprep.subr.bf16.mxu0 %v1467_v5  ;;  %v1477_v14 = vpack.c.bf16 %v444_v12, %v440_v11  ;;  %v453_v17 = vld [vmem:[%s2092_s28 + $0x78] sm:$0xff]  ;;  %1476 = vmatprep.subr.bf16.mxu1 %v1475_v9  ;;  %v1471_v18 = vpack.c.bf16 %v451_v15, %v447_v13  ;;  %v446_v20 = vld [vmem:[%s2092_s28 + $0x40] sm:$0xff]  ;;  %v448_v22 = vld [vmem:[%s2092_s28 + $0x50] sm:$0xff]  ;;  %s1235_s23 = sshll.u32 %s2195_s11, 4  ;;  %s2424_s25 = sld [smem:[#allocation26_spill]]  ;;  %s1236_s23 = int_to_ptr.vmem [resolvable:$true] %s1235_s23 }
  0x72   : > { %1470 = vmatpush1.bf16.msra.mxu0 %v1469_v10  ;;  %v1479_v19 = vpack.c.bf16 %v453_v17, %v449_v16  ;;  %v450_v21 = vld [vmem:[%s2092_s28 + $0x60] sm:$0xff]  ;;  %v452_v24 = vld [vmem:[%s2092_s28 + $0x70] sm:$0xff]  ;;  %v463_v29 = vld [vmem:[%s2376_s3 + $0x8] sm:$0xff]  ;;  %s1219_s19 = sshll.u32 %s2188_s0, 4  ;;  %s1220_s19 = int_to_ptr.vmem [resolvable:$true] %s1219_s19 }
  0x73   : > { %1478 = vmatpush1.bf16.msra.mxu1 %v1477_v14  ;;  %v1473_v23 = vpack.c.bf16 %v450_v21, %v446_v20  ;;  %1472 = vmatprep.subr.bf16.mxu0 %v1471_v18  ;;  %v1481_v25 = vpack.c.bf16 %v452_v24, %v448_v22  ;;  %v462_v26 = vld [vmem:[%s2376_s3] sm:$0xff]  ;;  %v464_v27 = vld [vmem:[%s2376_s3 + $0x10] sm:$0xff]  ;;  %v465_v30 = vld [vmem:[%s2376_s3 + $0x18] sm:$0xff]  ;;  %s1686_s18 = scalar_lea.vmem %s1220_s19, 512 }
  0x74   : > { %1480 = vmatprep.subr.bf16.mxu1 %v1479_v19  ;;  %468 = vperm.xlu0 %1600, %v462_v26   ;;  %v458_v28 = vld [vmem:[%s2375_s2] sm:$0xff]  ;;  %v459_v31 = vld [vmem:[%s2375_s2 + $0x8] sm:$0xff]  ;;  %v460_v34 = vld [vmem:[%s2375_s2 + $0x10] sm:$0xff]  ;;  %p1687_p0 = scmp.ne.s32.totalorder %s1220_s19, %s1686_s18 }
  0x75   : > { %478 = vperm.xlu1 %1601, %v464_v27   ;;  %v696_v32 = vld [vmem:[%s2378_s5 + $0x8] sm:$0xff]  ;;  %v695_v33 = vld [vmem:[%s2378_s5] sm:$0xff]  ;;  %v461_v35 = vld [vmem:[%s2375_s2 + $0x18] sm:$0xff]  ;;  %s1460_s9 = sshll.u32 %s2421_s29, 3  ;;  %s1179_s7 = sand.u32 1, %s2422_s20  }
  0x76   : > { %1474 = vmatpush1.bf16.msra.mxu0 %v1473_v23  ;;  %s2235_s30 = sadd.s32 %s1460_s9, %s2398_s21  ;;  %s2248_s24 = scalar_lea.sflag [#allocation9], %s1179_s7 }
  0x77   : > { %1482 = vmatpush1.bf16.msra.mxu1 %v1481_v25  ;;  %s1461_s13 = sshll.u32 %s2235_s30, 7  ;;  %p2425_p3 = scmp.ne.s32.totalorder %s2423_s8, 0 }
  0x78   : > { %473 = vperm.xlu0 %1600, %v463_v29   ;;  %s2245_s28 = scalar_lea.hbm %s2424_s25, %s1461_s13  ;;  %s1857_s9 = smov [#allocation8]  }
  0x79   : > { %1433 = vmatmul.mubr.msk.f32.vlgmr.msra.gmra.mrb[0].mxu0 %vm486_vm0, %v458_v28  ;;  %483 = vperm.xlu1 %1601, %v465_v30   ;;  %p1688_p1 = pnand %p1687_p0, %p2425_p3  ;;  %s1690_s21 = sshll.u32 %s1857_s9, 4  ;;  %s1691_s21 = int_to_ptr.vmem [resolvable:$false] %s1690_s21 }
  0x7a   : > { %1437 = vmatmul.mubr.msk.f32.vlgmr.msra.gmra.mrb[0].mxu1 %vm486_vm0, %v458_v28  ;;  %569 = vmatprep.mubr.f32.mxu0 %v1855_v0  ;;  %s1692_s20 = scalar_lea.vmem %s1691_s21, 1024  ;;  %p1693_p7 = scmp.lt.s32.totalorder %s1220_s19, %s1691_s21 }
  0x7b   : > { %658 = vmatprep.mubr.f32.mxu1 %v1855_v0  ;;  %p1689_p13 = pneg %p1688_p1  ;;  %p1694_p10 = scmp.lt.s32.totalorder %s1692_s20, %s1686_s18 }
  0x7c   : > { %704 = vperm.xlu0 %1600, %v696_v32  }
  0x7d   : > { %1434 = vmatmul.mubr.msk.f32.gmra.mrb[2].mxu0 %vm486_vm0, %v459_v31  ;;  %699 = vperm.xlu1 %1601, %v695_v33   ;;  %v693_v33 = vld [vmem:[%s2377_s4] sm:$0xff]  ;;  %p1695_p9 = por %p1694_p10, %p1693_p7 }
  0x7e   : > { %1438 = vmatmul.mubr.msk.f32.gmra.mrb[2].mxu1 %vm486_vm0, %v459_v31  ;;  %575 = vmatprep.mubr.f32.mxu0 %v1855_v0 }
  0x7f   : > { %664 = vmatprep.mubr.f32.mxu1 %v1855_v0  ;;  %p1696_p12 = pnand %p1695_p9, %p1689_p13 }
  0x81   : > { %1435 = vmatmul.mubr.msk.f32.gmra.mrb[4].mxu0 %vm486_vm0, %v460_v34 }
  0x82   : > { %1439 = vmatmul.mubr.msk.f32.gmra.mrb[4].mxu1 %vm486_vm0, %v460_v34  ;;  %581 = vmatprep.mubr.f32.mxu0 %v1855_v0  ;;  %v694_v34 = vld [vmem:[%s2377_s4 + $0x8] sm:$0xff] }
  0x83   : > { %670 = vmatprep.mubr.f32.mxu1 %v1855_v0 }
  0x85   : > { %1436 = vmatmul.mubr.msk.f32.gmra.mrb[6].mxu0 %vm486_vm0, %v461_v35 }
  0x86   : > { %1440 = vmatmul.mubr.msk.f32.gmra.mrb[6].mxu1 %vm486_vm0, %v461_v35  ;;  %777 = vmatprep.mubr.f32.mxu0 %v1855_v0 }
  0x87   : > { %854 = vmatprep.mubr.f32.mxu1 %v1855_v0 }
  0xf3   : > { %v469_v36 = vpop.permute.xlu0 %468 }
  0xf4   : > { %v479_v50 = vpop.permute.xlu1 %478 }
  0xf7   : > { %v474_v42 = vpop.permute.xlu0 %473 }
  0xf8   : > { %v484_v9 = vpop.permute.xlu1 %483 }
  0xfc   : > { %v700_v35 = vpop.permute.xlu1 %699 }
 0x14c   : > { %v565_v37 = vpop.f32.mrb[0].mxu0 }
 0x14d   : > { %v654_v38 = vpop.f32.mrb[0].mxu1  ;;  %v567_v39 = vpop.f32.mrb[1].mxu0  ;;  %v566_v41 = vadd.f32 %v565_v37, %v469_v36 }
 0x14e   : > { %v656_v40 = vpop.f32.mrb[1].mxu1  ;;  %v655_v43 = vadd.f32 %v654_v38, %v469_v36  ;;  %v568_v44 = vadd.f32 %v567_v39, %v469_v36 }
 0x14f   : > { %v657_v46 = vadd.f32 %v656_v40, %v469_v36  ;;  %v677_v54 = vmax.f32 %v566_v41, 0.0 }
 0x150   : > { %v571_v45 = vpop.f32.mrb[2].mxu0  ;;  %v679_v57 = vmax.f32 %v655_v43, 0.0  ;;  %v678_v58 = vmax.f32 %v568_v44, 0.0  ;;  %v705_v44 = vpop.permute.xlu0 %704 }
 0x151   : > { %v572_v47 = vadd.f32 %v571_v45, %v474_v42  ;;  %v660_v48 = vpop.f32.mrb[2].mxu1  ;;  %v573_v49 = vpop.f32.mrb[3].mxu0  ;;  %v680_v62 = vmax.f32 %v657_v46, 0.0 }
 0x152   : > { %v661_v51 = vadd.f32 %v660_v48, %v474_v42  ;;  %v574_v52 = vadd.f32 %v573_v49, %v474_v42  ;;  %v662_v53 = vpop.f32.mrb[3].mxu1 }
 0x153   : > { %v681_v55 = vmax.f32 %v572_v47, 0.0  ;;  %v663_v56 = vadd.f32 %v662_v53, %v474_v42 }
 0x154   : > { %v683_v59 = vmax.f32 %v661_v51, 0.0  ;;  %v682_v60 = vmax.f32 %v574_v52, 0.0  ;;  %v577_v61 = vpop.f32.mrb[4].mxu0 }
 0x155   : > { %v1485_v63 = vpack.c.bf16 %v681_v55, %v677_v54  ;;  %v684_v1 = vmax.f32 %v663_v56, 0.0  ;;  %v666_v2 = vpop.f32.mrb[4].mxu1  ;;  %v579_v3 = vpop.f32.mrb[5].mxu0  ;;  %v578_v8 = vadd.f32 %v577_v61, %v479_v50  ;;  %v454_v61 = vld [vmem:[%s2103_s27] sm:$0xff] }
 0x156   : > { %v1493_v4 = vpack.c.bf16 %v683_v59, %v679_v57  ;;  %v1483_v5 = vpack.c.bf16 %v682_v60, %v678_v58  ;;  %v668_v6 = vpop.f32.mrb[5].mxu1  ;;  %v667_v10 = vadd.f32 %v666_v2, %v479_v50  ;;  %v580_v11 = vadd.f32 %v579_v3, %v479_v50 }
 0x157   : > { %v1491_v7 = vpack.c.bf16 %v684_v1, %v680_v62  ;;  %v669_v13 = vadd.f32 %v668_v6, %v479_v50  ;;  %v685_v20 = vmax.f32 %v578_v8, 0.0  ;;  %v456_v62 = vld [vmem:[%s2103_s27 + $0x10] sm:$0xff]  ;;  %v455_v1 = vld [vmem:[%s2103_s27 + $0x8] sm:$0xff] }
 0x158   : > { %v583_v12 = vpop.f32.mrb[6].mxu0  ;;  %1484 = vmatprep.subr.bf16.mxu0 %v1483_v5  ;;  %v687_v23 = vmax.f32 %v667_v10, 0.0  ;;  %v686_v24 = vmax.f32 %v580_v11, 0.0 }
 0x159   : > { %v584_v14 = vadd.f32 %v583_v12, %v484_v9  ;;  %v672_v15 = vpop.f32.mrb[6].mxu1  ;;  %1492 = vmatprep.subr.bf16.mxu1 %v1491_v7  ;;  %v585_v16 = vpop.f32.mrb[7].mxu0  ;;  %1486 = vmatpush1.bf16.msra.mxu0 %v1485_v63  ;;  %v688_v27 = vmax.f32 %v669_v13, 0.0 }
 0x15a   : > { %v673_v17 = vadd.f32 %v672_v15, %v484_v9  ;;  %v586_v18 = vadd.f32 %v585_v16, %v484_v9  ;;  %v674_v19 = vpop.f32.mrb[7].mxu1  ;;  %1494 = vmatpush1.bf16.msra.mxu1 %v1493_v4  ;;  %v457_v4 = vld [vmem:[%s2103_s27 + $0x18] sm:$0xff] }
 0x15b   : > { %v689_v21 = vmax.f32 %v584_v14, 0.0  ;;  %v675_v22 = vadd.f32 %v674_v19, %v484_v9 }
 0x15c   : > { %v691_v25 = vmax.f32 %v673_v17, 0.0  ;;  %v690_v26 = vmax.f32 %v586_v18, 0.0 }
 0x15d   : > { %v1489_v28 = vpack.c.bf16 %v689_v21, %v685_v20  ;;  %v692_v29 = vmax.f32 %v675_v22, 0.0 }
 0x15e   : > { %v1497_v30 = vpack.c.bf16 %v691_v25, %v687_v23  ;;  %v1487_v31 = vpack.c.bf16 %v690_v26, %v686_v24 }
 0x15f   : > { %v1495_v32 = vpack.c.bf16 %v692_v29, %v688_v27 }
 0x160   : > { %1488 = vmatprep.subr.bf16.mxu0 %v1487_v31 }
 0x161   : > { %1496 = vmatprep.subr.bf16.mxu1 %v1495_v32  ;;  %1490 = vmatpush1.bf16.msra.mxu0 %v1489_v28 }
 0x162   : > { %1498 = vmatpush1.bf16.msra.mxu1 %v1497_v30 }
 0x164   : > { %1441 = vmatmul.mubr.msk.f32.vlgmr.msra.gmra.mrb[8].mxu0 %vm486_vm0, %v693_v33 }
 0x165   : > { %1443 = vmatmul.mubr.msk.f32.vlgmr.msra.gmra.mrb[8].mxu1 %vm486_vm0, %v693_v33  ;;  %783 = vmatprep.mubr.f32.mxu0 %v1855_v0 }
 0x166   : > { %860 = vmatprep.mubr.f32.mxu1 %v1855_v0 }
 0x168   : > { %1442 = vmatmul.mubr.msk.f32.gmra.mrb[10].mxu0 %vm486_vm0, %v694_v34 }
 0x169   : > { %1444 = vmatmul.mubr.msk.f32.gmra.mrb[10].mxu1 %vm486_vm0, %v694_v34  ;;  %1036 = vmatprep.mubr.f32.mxu0 %v1855_v0 }
 0x16a   : > { %1125 = vmatprep.mubr.f32.mxu1 %v1855_v0 }
 0x237   : > { %v779_v36 = vpop.f32.mrb[8].mxu0 }
 0x238   : > { %v780_v37 = vadd.f32 %v779_v36, %v700_v35  ;;  %v856_v38 = vpop.f32.mrb[8].mxu1  ;;  %v781_v39 = vpop.f32.mrb[9].mxu0 }
 0x239   : > { %v857_v40 = vadd.f32 %v856_v38, %v700_v35  ;;  %v782_v41 = vadd.f32 %v781_v39, %v700_v35  ;;  %v858_v42 = vpop.f32.mrb[9].mxu1 }
 0x23a   : > { %1166 = vst [vmem:[%s2188_s0] sm:$0xff] %v780_v37  ;;  %v859_v43 = vadd.f32 %v858_v42, %v700_v35 }
 0x23b   : > { %1168 = vst [vmem:[%s2188_s0 + $0x10] sm:$0xff] %v857_v40  ;;  %1167 = vst [vmem:[%s2188_s0 + $0x8] sm:$0xff] %v782_v41  ;;  %v785_v45 = vpop.f32.mrb[10].mxu0 }
 0x23c   : > { %1169 = vst [vmem:[%s2188_s0 + $0x18] sm:$0xff] %v859_v43  ;;  %v786_v46 = vadd.f32 %v785_v45, %v705_v44  ;;  %v862_v47 = vpop.f32.mrb[10].mxu1  ;;  %v787_v48 = vpop.f32.mrb[11].mxu0 }
 0x23d   : > { %v863_v49 = vadd.f32 %v862_v47, %v705_v44  ;;  %v788_v50 = vadd.f32 %v787_v48, %v705_v44  ;;  %v864_v51 = vpop.f32.mrb[11].mxu1 }
 0x23e   : > { %v867_v52 = vmul.f32 0.5, %v786_v46  ;;  %1170 = vst [vmem:[%s2195_s11] sm:$0xff] %v786_v46  ;;  %v865_v53 = vadd.f32 %v864_v51, %v705_v44 }
 0x23f   : > { %v869_v54 = vmul.f32 0.5, %v863_v49  ;;  %1172 = vst [vmem:[%s2195_s11 + $0x10] sm:$0xff] %v863_v49  ;;  %v868_v55 = vmul.f32 0.5, %v788_v50  ;;  %1171 = vst [vmem:[%s2195_s11 + $0x8] sm:$0xff] %v788_v50 }
 0x240   : > { %v871_v56 = vmul.f32 1.442695, %v867_v52  ;;  %v870_v57 = vmul.f32 0.5, %v865_v53  ;;  %1173 = vst [vmem:[%s2195_s11 + $0x18] sm:$0xff] %v865_v53 }
 0x241   : > { %v875_v58 = vmul.f32 1.442695, %v869_v54  ;;  %v873_v59 = vmul.f32 1.442695, %v868_v55 }
 0x242   : > { %1602 = vpow2.f32 %v871_v56  ;;  %v877_v60 = vmul.f32 1.442695, %v870_v57 }
 0x243   : > { %1604 = vpow2.f32 %v875_v58 }
 0x244   : > { %1606 = vpow2.f32 %v873_v59 }
 0x245   : > { %1608 = vpow2.f32 %v877_v60 }
 0x24c   : > { %v1603_v63 = vpop.eup %1602 }
 0x24d   : > { %v1605_v2 = vpop.eup %1604  ;;  %v879_v3 = vmul.f32 %v1603_v63, %v454_v61 }
 0x24e   : > { %v1607_v5 = vpop.eup %1606  ;;  %v881_v6 = vmul.f32 %v1605_v2, %v456_v62 }
 0x24f   : > { %v1609_v7 = vpop.eup %1608  ;;  %v883_v8 = vadd.f32 %v879_v3, %v780_v37  ;;  %v880_v9 = vmul.f32 %v1607_v5, %v455_v1 }
 0x250   : > { %v885_v10 = vadd.f32 %v881_v6, %v857_v40  ;;  %v882_v11 = vmul.f32 %v1609_v7, %v457_v4 }
 0x251   : > { %v887_v12 = vrot.slane %v883_v8, 4  ;;  %v884_v13 = vadd.f32 %v880_v9, %v782_v41 }
 0x252   : > { %v899_v14 = vrot.slane %v885_v10, 4  ;;  %v886_v15 = vadd.f32 %v882_v11, %v859_v43 }
 0x253   : > { %v888_v16 = vmax.f32 %v883_v8, %v887_v12  ;;  %v893_v17 = vrot.slane %v884_v13, 4 }
 0x254   : > { %v900_v18 = vmax.f32 %v885_v10, %v899_v14  ;;  %v905_v19 = vrot.slane %v886_v15, 4 }
 0x255   : > { %v889_v20 = vrot.slane %v888_v16, 2  ;;  %v894_v21 = vmax.f32 %v884_v13, %v893_v17 }
 0x256   : > { %v901_v22 = vrot.slane %v900_v18, 2  ;;  %v906_v23 = vmax.f32 %v886_v15, %v905_v19 }
 0x257   : > { %v890_v24 = vmax.f32 %v888_v16, %v889_v20  ;;  %v895_v25 = vrot.slane %v894_v21, 2  ;;  %v956_v20 = vld [vmem:[%s2379_s6 + $0x8] sm:$0xff] }
 0x258   : > { %v902_v26 = vmax.f32 %v900_v18, %v901_v22  ;;  %v907_v27 = vrot.slane %v906_v23, 2  ;;  %v955_v18 = vld [vmem:[%s2379_s6] sm:$0xff]  ;;  %v958_v22 = vld [vmem:[%s2379_s6 + $0x18] sm:$0xff] }
 0x259   : > { %v891_v28 = vrot.slane %v890_v24, 1  ;;  %v896_v29 = vmax.f32 %v894_v21, %v895_v25  ;;  %v957_v21 = vld [vmem:[%s2379_s6 + $0x10] sm:$0xff] }
 0x25a   : > { %v903_v30 = vrot.slane %v902_v26, 1  ;;  %v908_v31 = vmax.f32 %v906_v23, %v907_v27 }
 0x25b   : > { %v892_v32 = vmax.f32 %v890_v24, %v891_v28  ;;  %v897_v33 = vrot.slane %v896_v29, 1 }
 0x25c   : > { %v904_v34 = vmax.f32 %v902_v26, %v903_v30  ;;  %v909_v35 = vrot.slane %v908_v31, 1 }
 0x25d   : > { %v911_v36 = vsub.f32 %v883_v8, %v892_v32  ;;  %v898_v37 = vmax.f32 %v896_v29, %v897_v33 }
 0x25e   : > { %v913_v38 = vsub.f32 %v885_v10, %v904_v34  ;;  %v910_v39 = vmax.f32 %v908_v31, %v909_v35 }
 0x25f   : > { %v915_v40 = vmul.f32 1.442695, %v911_v36  ;;  %v912_v41 = vsub.f32 %v884_v13, %v898_v37 }
 0x260   : > { %v919_v42 = vmul.f32 1.442695, %v913_v38  ;;  %v914_v43 = vsub.f32 %v886_v15, %v910_v39 }
 0x261   : > { %1610 = vpow2.f32 %v915_v40  ;;  %v917_v44 = vmul.f32 1.442695, %v912_v41 }
 0x262   : > { %1612 = vpow2.f32 %v919_v42  ;;  %v921_v45 = vmul.f32 1.442695, %v914_v43 }
 0x263   : > { %1614 = vpow2.f32 %v917_v44 }
 0x264   : > { %1616 = vpow2.f32 %v921_v45 }
 0x26b   : > { %v1611_v46 = vpop.eup %1610 }
 0x26c   : > { %v1613_v47 = vpop.eup %1612  ;;  %v923_v48 = vrot.slane %v1611_v46, 4 }
 0x26d   : > { %v1615_v49 = vpop.eup %1614  ;;  %v935_v50 = vrot.slane %v1613_v47, 4 }
 0x26e   : > { %v1617_v51 = vpop.eup %1616  ;;  %v929_v52 = vrot.slane %v1615_v49, 4  ;;  %v924_v53 = vadd.f32 %v1611_v46, %v923_v48 }
 0x26f   : > { %v941_v54 = vrot.slane %v1617_v51, 4  ;;  %v936_v55 = vadd.f32 %v1613_v47, %v935_v50 }
 0x270   : > { %v930_v56 = vadd.f32 %v1615_v49, %v929_v52  ;;  %v925_v57 = vrot.slane %v924_v53, 2 }
 0x271   : > { %v942_v58 = vadd.f32 %v1617_v51, %v941_v54  ;;  %v937_v59 = vrot.slane %v936_v55, 2 }
 0x272   : > { %v931_v60 = vrot.slane %v930_v56, 2  ;;  %v926_v61 = vadd.f32 %v925_v57, %v924_v53 }
 0x273   : > { %v943_v62 = vrot.slane %v942_v58, 2  ;;  %v938_v63 = vadd.f32 %v937_v59, %v936_v55 }
 0x274   : > { %v932_v1 = vadd.f32 %v931_v60, %v930_v56  ;;  %v927_v2 = vrot.slane %v926_v61, 1 }
 0x275   : > { %v944_v3 = vadd.f32 %v943_v62, %v942_v58  ;;  %v939_v4 = vrot.slane %v938_v63, 1 }
 0x276   : > { %v933_v5 = vrot.slane %v932_v1, 1  ;;  %v928_v6 = vadd.f32 %v927_v2, %v926_v61 }
 0x277   : > { %v945_v7 = vrot.slane %v944_v3, 1  ;;  %v940_v8 = vadd.f32 %v939_v4, %v938_v63 }
 0x278   : > { %v934_v9 = vadd.f32 %v933_v5, %v932_v1  ;;  %1618 = vrcp.f32 %v928_v6 }
 0x279   : > { %v946_v10 = vadd.f32 %v945_v7, %v944_v3  ;;  %1620 = vrcp.f32 %v940_v8 }
 0x27a   : > { %1622 = vrcp.f32 %v934_v9 }
 0x27b   : > { %1624 = vrcp.f32 %v946_v10 }
 0x282   : > { %v1619_v11 = vpop.eup %1618 }
 0x283   : > { %v1621_v12 = vpop.eup %1620  ;;  %v951_v17 = vmul.f32 %v1619_v11, %v1611_v46 }
 0x284   : > { %v1623_v13 = vpop.eup %1622  ;;  %v953_v19 = vmul.f32 %v1621_v12, %v1613_v47 }
 0x285   : > { %v1625_v14 = vpop.eup %1624  ;;  %v952_v15 = vmul.f32 %v1623_v13, %v1615_v49 }
 0x286   : > { %v954_v16 = vmul.f32 %v1625_v14, %v1617_v51 }
 0x287   : > { %972 = vmatprep.subr.mxu0 %v952_v15 }
 0x288   : > { %1061 = vmatprep.subr.mxu1 %v954_v16  ;;  %973 = vmatpush1.msra.mxu0 %v951_v17 }
 0x289   : > { %1062 = vmatpush1.msra.mxu1 %v953_v19  ;;  %1445 = vmatmul.mubr.msk.f32.vlgmr.msra.gmra.mrb[12].mxu0 %vm959_vm1, %v955_v18 }
 0x28a   : > { %1449 = vmatmul.mubr.msk.f32.vlgmr.msra.gmra.mrb[12].mxu1 %vm959_vm1, %v955_v18  ;;  %1042 = vmatprep.mubr.f32.mxu0 %v1855_v0 }
 0x28b   : > { %1131 = vmatprep.mubr.f32.mxu1 %v1855_v0 }
 0x28d   : > { %1446 = vmatmul.mubr.msk.f32.gmra.mrb[14].mxu0 %vm959_vm1, %v956_v20 }
 0x28e   : > { %1450 = vmatmul.mubr.msk.f32.gmra.mrb[14].mxu1 %vm959_vm1, %v956_v20  ;;  %1048 = vmatprep.mubr.f32.mxu0 %v1855_v0 }
 0x28f   : > { %1137 = vmatprep.mubr.f32.mxu1 %v1855_v0 }
 0x291   : > { %1447 = vmatmul.mubr.msk.f32.gmra.mrb[16].mxu0 %vm959_vm1, %v957_v21 }
 0x292   : > { %1451 = vmatmul.mubr.msk.f32.gmra.mrb[16].mxu1 %vm959_vm1, %v957_v21  ;;  %1054 = vmatprep.mubr.f32.mxu0 %v1855_v0 }
 0x293   : > { %1143 = vmatprep.mubr.f32.mxu1 %v1855_v0 }
 0x295   : > { %1448 = vmatmul.mubr.msk.f32.gmra.mrb[18].mxu0 %vm959_vm1, %v958_v22 }
 0x296   : > { %1452 = vmatmul.mubr.msk.f32.gmra.mrb[18].mxu1 %vm959_vm1, %v958_v22 }
 0x297   : > { %1699 = shalt.err (!%p1696_p12)
}
 0x298   : > { %s1700_s0 = scalar_lea.hbm %s2245_s28, 512  ;;  %s1704_s17 = scalar_lea.hbm %s2424_s25, 2048 }
 0x299   : > { %p1701_p5 = scmp.ne.s32.totalorder %s2245_s28, %s1700_s0  ;;  %p1705_p4 = scmp.lt.u32.totalorder %s2245_s28, %s2424_s25 }
 0x29a   : > { %p1706_p6 = scmp.lt.u32.totalorder %s1704_s17, %s1700_s0  ;;  %p1708_p0 = scmp.lt.u32.totalorder %s1700_s0, %s2245_s28 }
 0x29b   : > { %p1702_p11 = pnand %p1701_p5, %p2425_p3 }
 0x29c   : > { %p1707_p8 = por %p1706_p6, %p1705_p4 }
 0x29d   : > { %p1703_p2 = pneg %p1702_p11 }
 0x29e   : > { %p1709_p1 = por %p1708_p0, %p1707_p8 }
 0x2a0   : > { %p1710_p13 = pnand %p1709_p1, %p1703_p2 }
 0x2a2   : > { %1713 = shalt.err (!%p1710_p13)
}
 0x2a3   : > { %1504 = dma.vmem_to_hbm [thread:$0]  (%p2425_p3), %s1220_s19, 512, %s2245_s28, %s2248_s24  }
 0x2a4   : > { %s2426_s7 = sld [smem:[#allocation27_spill]]  ;;  %s1714_s17 = scalar_lea.vmem %s1236_s23, 512 }
 0x2a5   : > { %p1715_p7 = scmp.ne.s32.totalorder %s1236_s23, %s1714_s17  ;;  %s1858_s0 = smov [#allocation10]  }
 0x2a6   : > { %s1718_s9 = sshll.u32 %s1858_s0, 4  ;;  %s1719_s9 = int_to_ptr.vmem [resolvable:$false] %s1718_s9 }
 0x2a7   : > { %p1716_p10 = pnand %p1715_p7, %p2425_p3  ;;  %s1720_s21 = scalar_lea.vmem %s1719_s9, 1024 }
 0x2a8   : > { %p1721_p12 = scmp.lt.s32.totalorder %s1236_s23, %s1719_s9  ;;  %p1722_p5 = scmp.lt.s32.totalorder %s1720_s21, %s1714_s17 }
 0x2a9   : > { %p1717_p9 = pneg %p1716_p10 }
 0x2aa   : > { %s1233_s27 = scalar_lea.hbm %s2426_s7, %s1461_s13  ;;  %p1723_p11 = por %p1722_p5, %p1721_p12 }
 0x2ac   : > { %p1724_p2 = pnand %p1723_p11, %p1717_p9 }
 0x2ae   : > { %1727 = shalt.err (!%p1724_p2)
}
 0x2af   : > { %s1728_s11 = scalar_lea.hbm %s1233_s27, 512  ;;  %s1732_s28 = scalar_lea.hbm %s2426_s7, 2048 }
 0x2b0   : > { %p1729_p4 = scmp.ne.s32.totalorder %s1233_s27, %s1728_s11  ;;  %p1733_p0 = scmp.lt.u32.totalorder %s1233_s27, %s2426_s7 }
 0x2b1   : > { %p1734_p1 = scmp.lt.u32.totalorder %s1732_s28, %s1728_s11  ;;  %p1736_p7 = scmp.lt.u32.totalorder %s1728_s11, %s1233_s27 }
 0x2b2   : > { %p1730_p6 = pnand %p1729_p4, %p2425_p3 }
 0x2b3   : > { %p1735_p13 = por %p1734_p1, %p1733_p0 }
 0x2b4   : > { %p1731_p8 = pneg %p1730_p6 }
 0x2b5   : > { %p1737_p10 = por %p1736_p7, %p1735_p13 }
 0x2b7   : > { %p1738_p9 = pnand %p1737_p10, %p1731_p8 }
 0x2b9   : > { %1741 = shalt.err (!%p1738_p9)
}
 0x2ba   : > { %1505 = dma.vmem_to_hbm [thread:$0]  (%p2425_p3), %s1236_s23, 512, %s1233_s27, %s2248_s24  }
 0x2bb   : > { %s2290_s20 = scalar_lea.vmem [#allocation7], %s1428_s26  ;;  %s1457_s23 = sshll.u32 %s2421_s29, 5 }
 0x2bc   : > { %s2427_s26 = sshll.u32 %s1832_s12, 2  ;;  %s1200_s29 = sshll.u32 %s2290_s20, 4  ;;  %s2313_s29 = int_to_ptr.vmem [resolvable:$true] %s1200_s29 }
 0x2bd   : > { %s1197_s24 = sadd.s32 %s1457_s23, %s2427_s26  ;;  %s2428_s0 = sld [smem:[#allocation25_spill]] }
 0x2be   : > { %s1458_s27 = sshll.u32 %s1197_s24, 7  ;;  %s1175_s21 = scalar_lea.sflag [#allocation4], %s2086_s22 }
 0x2bf   : > { %s1742_s11 = scalar_lea.vmem %s2313_s29, 2048  ;;  %s1859_s30 = smov [#allocation7]  }
 0x2c0   : > { %p1743_p12 = scmp.ne.s32.totalorder %s2313_s29, %s1742_s11  ;;  %s1746_s13 = sshll.u32 %s1859_s30, 4  ;;  %s1747_s13 = int_to_ptr.vmem [resolvable:$false] %s1746_s13 }
 0x2c1   : > { %s1748_s28 = scalar_lea.vmem %s1747_s13, 4096  ;;  %p1749_p2 = scmp.lt.s32.totalorder %s2313_s29, %s1747_s13 }
 0x2c2   : > { %p1744_p5 = pnand %p1743_p12, %p2425_p3  ;;  %p1750_p4 = scmp.lt.s32.totalorder %s1748_s28, %s1742_s11 }
 0x2c3   : > { %s2311_s9 = scalar_lea.hbm %s2428_s0, %s1458_s27 }
 0x2c4   : > { %p1745_p11 = pneg %p1744_p5  ;;  %p1751_p6 = por %p1750_p4, %p1749_p2 }
 0x2c6   : > { %p1752_p8 = pnand %p1751_p6, %p1745_p11 }
 0x35c   : > { %v1038_v0 = vpop.f32.mrb[12].mxu0 }
 0x35d   : > { %1150 = vst [vmem:[%s2290_s20] sm:$0xff] %v1038_v0  ;;  %v1127_v23 = vpop.f32.mrb[12].mxu1  ;;  %v1040_v24 = vpop.f32.mrb[13].mxu0 }
 0x35e   : > { %1152 = vst [vmem:[%s2290_s20 + $0x10] sm:$0xff] %v1127_v23  ;;  %1151 = vst [vmem:[%s2290_s20 + $0x8] sm:$0xff] %v1040_v24  ;;  %v1129_v25 = vpop.f32.mrb[13].mxu1 }
 0x35f   : > { %1153 = vst [vmem:[%s2290_s20 + $0x18] sm:$0xff] %v1129_v25 }
 0x360   : > { %v1044_v26 = vpop.f32.mrb[14].mxu0 }
 0x361   : > { %1154 = vst [vmem:[%s2290_s20 + $0x20] sm:$0xff] %v1044_v26  ;;  %v1133_v27 = vpop.f32.mrb[14].mxu1  ;;  %v1046_v28 = vpop.f32.mrb[15].mxu0 }
 0x362   : > { %1156 = vst [vmem:[%s2290_s20 + $0x30] sm:$0xff] %v1133_v27  ;;  %1155 = vst [vmem:[%s2290_s20 + $0x28] sm:$0xff] %v1046_v28  ;;  %v1135_v29 = vpop.f32.mrb[15].mxu1 }
 0x363   : > { %1157 = vst [vmem:[%s2290_s20 + $0x38] sm:$0xff] %v1135_v29 }
 0x364   : > { %v1050_v30 = vpop.f32.mrb[16].mxu0 }
 0x365   : > { %1158 = vst [vmem:[%s2290_s20 + $0x40] sm:$0xff] %v1050_v30  ;;  %v1139_v31 = vpop.f32.mrb[16].mxu1  ;;  %v1052_v32 = vpop.f32.mrb[17].mxu0 }
 0x366   : > { %1160 = vst [vmem:[%s2290_s20 + $0x50] sm:$0xff] %v1139_v31  ;;  %1159 = vst [vmem:[%s2290_s20 + $0x48] sm:$0xff] %v1052_v32  ;;  %v1141_v33 = vpop.f32.mrb[17].mxu1 }
 0x367   : > { %1161 = vst [vmem:[%s2290_s20 + $0x58] sm:$0xff] %v1141_v33 }
 0x368   : > { %v1056_v34 = vpop.f32.mrb[18].mxu0 }
 0x369   : > { %1162 = vst [vmem:[%s2290_s20 + $0x60] sm:$0xff] %v1056_v34  ;;  %v1145_v35 = vpop.f32.mrb[18].mxu1  ;;  %v1058_v36 = vpop.f32.mrb[19].mxu0 }
 0x36a   : > { %1164 = vst [vmem:[%s2290_s20 + $0x70] sm:$0xff] %v1145_v35  ;;  %1163 = vst [vmem:[%s2290_s20 + $0x68] sm:$0xff] %v1058_v36  ;;  %v1147_v37 = vpop.f32.mrb[19].mxu1 }
 0x36b   : > { %1165 = vst [vmem:[%s2290_s20 + $0x78] sm:$0xff] %v1147_v37 }
 0x36c   : > { %1755 = shalt.err (!%p1752_p8)
}
 0x36d   : > { %s1756_s19 = scalar_lea.hbm %s2311_s9, 2048  ;;  %s1760_s23 = scalar_lea.hbm %s2428_s0, 8192 }
 0x36e   : > { %p1757_p0 = scmp.ne.s32.totalorder %s2311_s9, %s1756_s19  ;;  %p1761_p7 = scmp.lt.u32.totalorder %s2311_s9, %s2428_s0 }
 0x36f   : > { %p1762_p10 = scmp.lt.u32.totalorder %s1760_s23, %s1756_s19  ;;  %p1764_p12 = scmp.lt.u32.totalorder %s1756_s19, %s2311_s9 }
 0x370   : > { %p1758_p1 = pnand %p1757_p0, %p2425_p3 }
 0x371   : > { %p1763_p9 = por %p1762_p10, %p1761_p7 }
 0x372   : > { %p1759_p13 = pneg %p1758_p1 }
 0x373   : > { %p1765_p5 = por %p1764_p12, %p1763_p9 }
 0x375   : > { %p1766_p11 = pnand %p1765_p5, %p1759_p13 }
 0x377   : > { %1769 = shalt.err (!%p1766_p11)
}
 0x378   : > { %s1860_s27 = smov 512   ;;  %s1861_s12 = smov 1024  }
 0x379   : > { %s1862_s17 = smov 32  }
 0x37a   : > { %1503 = dma.vmem_to_hbm [thread:$0]  (%p2425_p3), %s2313_s29, 2048, %s2311_s9, %s1175_s21, %s1860_s27, %s1861_s12, %s1862_s17  }
 0x37b PF: > { %s2429_s11 = sld [smem:[#allocation15_spill]]  ;;  %s2430_s30 = sld [smem:[#allocation22_spill]] }
 0x37c   : > { %p1527_p2 = scmp.ge.s32.totalorder %s1848_s16, 2 }
 0x381   : > { %s1247_s13 = sand.u32 1, %s2429_s11   ;;  %p2431_p4 = scmp.ne.s32.totalorder %s2430_s30, 0 }
 0x382   : > { %s1248_s28 = scalar_lea.sflag [#allocation4], %s1247_s13 }
 0x383   : > { %p1517_p6 = pnand %p1527_p2, %p2431_p4 }
 0x385   : > { %1811 = dma.done.wait (!%p1517_p6), %s1248_s28, 2048  }
 0x386   : > { %1813 = vsyncadd (!%p1517_p6), %s1248_s28, 4294965248  ;;  %s2432_s19 = sadd.s32 4294967294, %s1848_s16  }
 0x387   : > { %s1256_s18 = sand.u32 1, %s2432_s19  }
 0x388   : > { %s1257_s20 = scalar_lea.sflag [#allocation9], %s1256_s18 }
 0x389   : > { %1815 = dma.done.wait (!%p1517_p6), %s1257_s20, 1024  }
 0x38a   : > { %1817 = vsyncadd (!%p1517_p6), %s1257_s20, 4294966272  ;;  %s32_s16 = sadd.s32 1, %s1848_s16   ;;  %s2433_s22 = sld [smem:[#allocation16_spill]] }
 0x38b   : > { %p29_p3 = scmp.ge.s32.totalorder %s32_s16, 6   ;;  %s2434_s11 = sld [smem:[#allocation23_spill]] }
 0x38c   : > { %s2435_s8 = sld [smem:[#allocation19_spill]]  ;;  %s2436_s29 = sld [smem:[#allocation20_spill]] }
 0x38d   : > { %s2437_s30 = smov %s1824_s10  ;;  %s2439_s12 = smov %s1840_s14 }
 0x38e   : > { %s2440_s13 = smov %s1844_s15  ;;  %31 = sbr.rel (!%p29_p3) target bundleno = 16 (0x10), region = 138 }
 0x390   : > { %s2438_s10 = smov %s2433_s22 }
 0x392   : > { %s2441_s14 = smov %s2435_s8  ;;  %s2442_s15 = smov %s2436_s29 }
 0x395   :  { %1271 = vsyncpa [#allocation3], 1 }
 0x396   :  { %1273 = vsyncpa [#allocation3 + $0x1], 1 }
 0x397   :  { %1274 = vsyncpa [#allocation6], 1 }
 0x398   :  { %1276 = vsyncpa [#allocation6 + $0x1], 1 }
 0x399   :  { %1277 = vsyncpa [#allocation4], 1 }
 0x39a   :  { %1279 = vsyncpa [#allocation4 + $0x1], 1 }
 0x39b   :  { %1280 = vsyncpa [#allocation9], 1 }
 0x39c   :  { %1282 = vsyncpa [#allocation9 + $0x1], 1 }

</bundles_post_ra>
